<compile_context>
chip_gen: v5e
topology: v5e:2x2
jax: 0.10.0
libtpu: 0.0.40
codegen_flags: <defaults>
</compile_context>

<pallas_src>
import functools

import jax
import jax.numpy as jnp
from jax.experimental import pallas as pl
from jax.experimental.pallas import tpu as pltpu


# --------------------------------------------------------------------------
# Kernel helpers (traced inside the Pallas kernel); channel rows on sublanes,
# cells on lanes.
# --------------------------------------------------------------------------
def _xywh2xyxy(x, y, w, h, S):
    # matches YoloLoss.xywh2xyxy: x/S - 0.5w, y/S - 0.5h, x/S + 0.5w, y/S + 0.5h
    return (x / S - 0.5 * w, y / S - 0.5 * h, x / S + 0.5 * w, y / S + 0.5 * h)


def _iou(px1, py1, px2, py2, tx1, ty1, tx2, ty2):
    # matches compute_iou (with the wh<0 clamp)
    iw = jnp.maximum(jnp.minimum(px2, tx2) - jnp.maximum(px1, tx1), 0.0)
    ih = jnp.maximum(jnp.minimum(py2, ty2) - jnp.maximum(py1, ty1), 0.0)
    inter = iw * ih
    a1 = (px2 - px1) * (py2 - py1)
    a2 = (tx2 - tx1) * (ty2 - ty1)
    return inter / (a1 + a2 - inter)


def _cdiv(a, b):
    return (a + b - 1) // b


# --------------------------------------------------------------------------
# Pallas kernel: one M-tile per grid step, accumulates 4 un-normalised sums
# into the resident (1, 4) output block:  [cls, noobj, reg, conf]
# --------------------------------------------------------------------------
def yolo_loss_kernel(pred_ref,      # (30, TM)  rows 0-4 box0, 5-9 box1, 10-29 classes
                     tgt_box_ref,   # (4, TM)
                     tgt_cls_ref,   # (20, TM)
                     mask_ref,      # (1, TM) float {0., 1.}
                     out_ref,       # (1, 4) resident accumulator
                     *, S, l_coord, l_noobj):
    @pl.when(pl.program_id(0) == 0)
    def _init():
        out_ref[...] = jnp.zeros_like(out_ref)

    obj = mask_ref[...] > 0.5                     # (1, TM) single predicate

    pred = pred_ref[...]                          # (30, TM)
    box0 = pred[0:5, :]                           # (5, TM)  [x, y, w, h, conf]
    box1 = pred[5:10, :]                          # (5, TM)
    cls_pred = pred[10:30, :]                     # (20, TM)

    # --- classification loss (object cells only) --------------------------
    dcls = cls_pred - tgt_cls_ref[...]            # (20, TM)
    cls_p = jnp.sum(jnp.where(obj, dcls * dcls, 0.0), keepdims=True)   # (1, 1)

    # --- no-object confidence loss -----------------------------------------
    c0 = box0[4:5, :]
    c1 = box1[4:5, :]
    noobj_p = l_noobj * jnp.sum(jnp.where(obj, 0.0, c0 * c0 + c1 * c1),
                                keepdims=True)

    # --- best-IoU box selection (find_best_iou_boxes, vectorised) ----------
    tgt = tgt_box_ref[...]                        # (4, TM)
    tx1, ty1, tx2, ty2 = _xywh2xyxy(tgt[0:1, :], tgt[1:2, :],
                                    tgt[2:3, :], tgt[3:4, :], S)

    def box_iou(b):
        bx1, by1, bx2, by2 = _xywh2xyxy(b[0:1, :], b[1:2, :],
                                        b[2:3, :], b[3:4, :], S)
        return _iou(bx1, by1, bx2, by2, tx1, ty1, tx2, ty2)

    iou0 = box_iou(box0)                          # (1, TM)
    iou1 = box_iou(box1)                          # (1, TM)
    use0 = iou0 >= iou1                           # tie -> first box (torch.max)
    best_iou = jnp.where(use0, iou0, iou1)        # (1, TM)
    best_box = jnp.where(use0, box0, box1)        # (5, TM)

    # --- containing-object confidence loss ----------------------------------
    dconf = best_box[4:5, :] - best_iou
    conf_p = jnp.sum(jnp.where(obj, dconf * dconf, 0.0), keepdims=True)

    # --- bbox regression loss -----------------------------------------------
    dx = best_box[0:1, :] - tgt[0:1, :]
    dy = best_box[1:2, :] - tgt[1:2, :]
    dw = jnp.sqrt(best_box[2:3, :]) - jnp.sqrt(tgt[2:3, :])
    dh = jnp.sqrt(best_box[3:4, :]) - jnp.sqrt(tgt[3:4, :])
    per_cell = dx * dx + dy * dy + dw * dw + dh * dh
    reg_p = l_coord * jnp.sum(jnp.where(obj, per_cell, 0.0), keepdims=True)

    # --- pack 4 scalars into one lane-grouped (1, 4) partial and accumulate --
    lane = jax.lax.broadcasted_iota(jnp.int32, (1, 4), 1)
    partial = (jnp.where(lane == 0, cls_p, 0.0) +
               jnp.where(lane == 1, noobj_p, 0.0) +
               jnp.where(lane == 2, reg_p, 0.0) +
               jnp.where(lane == 3, conf_p, 0.0))
    out_ref[...] = out_ref[...] + partial


# --------------------------------------------------------------------------
# Wrapper: channel-first transpose + lane padding + tiled pallas_call
# --------------------------------------------------------------------------
def yolo_loss(pred_tensor, target_boxes, target_cls, has_object_map,
              *, S, B=2, l_coord=5.0, l_noobj=0.5, max_tile=8192):
    assert B == 2, "kernel is specialised for B=2 (as in the reference module)"
    N = pred_tensor.shape[0]
    C = B * 5 + 20
    M = N * S * S

    # Channel-first glue: one fused transpose of the whole pred slab.
    pred = jnp.transpose(pred_tensor.reshape(M, C)).astype(jnp.float32)       # (30, M)
    tgt_box = jnp.transpose(target_boxes.reshape(M, 4)).astype(jnp.float32)   # (4, M)
    tgt_cls = jnp.transpose(target_cls.reshape(M, 20)).astype(jnp.float32)    # (20, M)
    mask = has_object_map.reshape(1, M).astype(jnp.float32)                   # (1, M)

    # Tile the cell (lane) axis: multiples of 128, at most `max_tile` cells.
    num_tiles = max(1, _cdiv(M, max_tile))
    TM = _cdiv(_cdiv(M, num_tiles), 128) * 128
    M_pad = TM * num_tiles

    pad = M_pad - M
    if pad:
        # zero padding contributes exactly 0 to every loss term (mask=0, conf=0)
        pred = jnp.pad(pred, ((0, 0), (0, pad)))
        tgt_box = jnp.pad(tgt_box, ((0, 0), (0, pad)))
        tgt_cls = jnp.pad(tgt_cls, ((0, 0), (0, pad)))
        mask = jnp.pad(mask, ((0, 0), (0, pad)))

    kernel = functools.partial(yolo_loss_kernel, S=float(S),
                               l_coord=float(l_coord), l_noobj=float(l_noobj))

    sums = pl.pallas_call(
        kernel,
        out_shape=jax.ShapeDtypeStruct((1, 4), jnp.float32),
        grid_spec=pltpu.PrefetchScalarGridSpec(
            num_scalar_prefetch=0,
            grid=(num_tiles,),
            in_specs=[
                pl.BlockSpec((C, TM), lambda i: (0, i)),
                pl.BlockSpec((4, TM), lambda i: (0, i)),
                pl.BlockSpec((20, TM), lambda i: (0, i)),
                pl.BlockSpec((1, TM), lambda i: (0, i)),
            ],
            out_specs=pl.BlockSpec((1, 4), lambda i: (0, 0)),
        ),
        compiler_params=pltpu.CompilerParams(
            dimension_semantics=("arbitrary",)),
    )(pred, tgt_box, tgt_cls, mask)

    nb = jnp.float32(N)
    cls_loss = sums[0, 0] / nb
    no_obj_loss = sums[0, 1] / nb
    reg_loss = sums[0, 2] / nb
    conf_loss = sums[0, 3] / nb
    total = reg_loss + conf_loss + no_obj_loss + cls_loss
    return {
        "total_loss": total,
        "reg_loss": reg_loss,
        "containing_obj_loss": conf_loss,
        "no_obj_loss": no_obj_loss,
        "cls_loss": cls_loss,
    }


# --------------------------------------------------------------------------
# Pure-JAX reference (mirrors the PyTorch module) for a correctness check
# --------------------------------------------------------------------------
def yolo_loss_ref(pred, target_boxes, target_cls, has_obj,
                  *, S, B=2, l_coord=5.0, l_noobj=0.5):
    N = pred.shape[0]
    M = N * S * S
    boxes = pred[..., : B * 5].reshape(M, B, 5)
    cls_pred = pred[..., -20:].reshape(M, 20)
    tgt = target_boxes.reshape(M, 4)
    tcls = target_cls.reshape(M, 20)
    m = has_obj.reshape(M).astype(jnp.float32)
    obj = m > 0.5

    cls_loss = jnp.sum(m[:, None] * (cls_pred - tcls) ** 2)
    noobj = l_noobj * jnp.sum((1.0 - m)[:, None] * boxes[:, :, 4] ** 2)

    def to_xyxy(b):
        x, y, w, h = b[..., 0], b[..., 1], b[..., 2], b[..., 3]
        return jnp.stack([x / S - 0.5 * w, y / S - 0.5 * h,
                          x / S + 0.5 * w, y / S + 0.5 * h], axis=-1)

    p = to_xyxy(boxes[:, :, :4])            # (M, B, 4)
    t = to_xyxy(tgt)[:, None, :]            # (M, 1, 4)
    iw = jnp.maximum(jnp.minimum(p[..., 2], t[..., 2])
                     - jnp.maximum(p[..., 0], t[..., 0]), 0.0)
    ih = jnp.maximum(jnp.minimum(p[..., 3], t[..., 3])
                     - jnp.maximum(p[..., 1], t[..., 1]), 0.0)
    inter = iw * ih
    a1 = (p[..., 2] - p[..., 0]) * (p[..., 3] - p[..., 1])
    a2 = (t[..., 2] - t[..., 0]) * (t[..., 3] - t[..., 1])
    ious = inter / (a1 + a2 - inter)        # (M, B)
    idx = jnp.argmax(ious, axis=1)
    best_iou = jnp.max(ious, axis=1)
    best_box = jnp.take_along_axis(boxes, idx[:, None, None], axis=1)[:, 0]

    conf = jnp.sum(jnp.where(obj, (best_box[:, 4] - best_iou) ** 2, 0.0))
    dxy = jnp.sum((best_box[:, :2] - tgt[:, :2]) ** 2, axis=1)
    dwh = jnp.sum((jnp.sqrt(best_box[:, 2:4]) - jnp.sqrt(tgt[:, 2:4])) ** 2,
                  axis=1)
    reg = l_coord * jnp.sum(jnp.where(obj, dxy + dwh, 0.0))

    nb = jnp.float32(N)
    cls_loss, noobj, reg, conf = cls_loss / nb, noobj / nb, reg / nb, conf / nb
    return {
        "total_loss": reg + conf + noobj + cls_loss,
        "reg_loss": reg,
        "containing_obj_loss": conf,
        "no_obj_loss": noobj,
        "cls_loss": cls_loss,
    }


def _make_inputs(key, N, S, B):
    k1, k2, k3, k4 = jax.random.split(key, 4)
    # positive w/h so sqrt() in the regression loss stays finite
    pred_tensor = jax.random.uniform(k1, (N, S, S, B * 5 + 20),
                                     jnp.float32, minval=0.05, maxval=0.95)
    target_boxes = jax.random.uniform(k2, (N, S, S, 4),
                                      jnp.float32, minval=0.05, maxval=0.95)
    target_cls = jax.random.uniform(k3, (N, S, S, 20), jnp.float32)
    has_object_map = jax.random.bernoulli(k4, 0.5, (N, S, S))
    return pred_tensor, target_boxes, target_cls, has_object_map


if __name__ == "__main__":
    B, l_coord, l_noobj = 2, 5.0, 0.5
    key = jax.random.PRNGKey(0)

    # test 1: small grid (exercises lane padding M=32 -> 128, single tile)
    N, S = 2, 4
    inputs = _make_inputs(key, N, S, B)
    out = yolo_loss(*inputs, S=S, B=B, l_coord=l_coord, l_noobj=l_noobj)
    out = jax.block_until_ready(out)
    ref = yolo_loss_ref(*inputs, S=S, B=B, l_coord=l_coord, l_noobj=l_noobj)
    for k in out:
        assert jnp.allclose(out[k], ref[k], rtol=2e-5, atol=1e-5), (
            k, float(out[k]), float(ref[k]))

    # test 2: force a multi-tile grid to exercise the running accumulator
    N2, S2 = 2, 16                                  # M = 512, 4 tiles of 128
    inputs2 = _make_inputs(jax.random.PRNGKey(1), N2, S2, B)
    out2 = yolo_loss(*inputs2, S=S2, B=B, l_coord=l_coord, l_noobj=l_noobj,
                     max_tile=128)
    out2 = jax.block_until_ready(out2)
    ref2 = yolo_loss_ref(*inputs2, S=S2, B=B, l_coord=l_coord, l_noobj=l_noobj)
    for k in out2:
        assert jnp.allclose(out2[k], ref2[k], rtol=2e-5, atol=1e-5), (
            k, float(out2[k]), float(ref2[k]))

    print("KERNEL_OK")
</pallas_src>

<mosaic_0001>
module attributes {stable_mosaic.version = 11 : i64} {
  func.func @yolo_loss_kernel(%arg0: i32, %arg1: memref<30x128xf32, #tpu.memory_space<vmem>>, %arg2: memref<4x128xf32, #tpu.memory_space<vmem>>, %arg3: memref<20x128xf32, #tpu.memory_space<vmem>>, %arg4: memref<1x128xf32, #tpu.memory_space<vmem>>, %arg5: memref<1x4xf32, #tpu.memory_space<vmem>>) attributes {dimension_semantics = [#tpu.dimension_semantics<arbitrary>], iteration_bounds = array<i64: 1>, scalar_prefetch = 0 : i64, scratch_operands = 0 : i64, tpu.core_type = #tpu.core_type<tc>, window_params = [{transform_indices = @transform_0, window_bounds = array<i64: 30, 128>}, {transform_indices = @transform_1, window_bounds = array<i64: 4, 128>}, {transform_indices = @transform_2, window_bounds = array<i64: 20, 128>}, {transform_indices = @transform_3, window_bounds = array<i64: 1, 128>}, {pipeline_mode = #tpu.pipeline_mode<synchronous>, transform_indices = @transform_4, window_bounds = array<i64: 1, 4>}]} {
    %c0_i32 = arith.constant 0 : i32
    %0 = arith.cmpi eq, %arg0, %c0_i32 : i32
    %1 = arith.extui %0 : i1 to i32
    %c0_i32_0 = arith.constant 0 : i32
    %2 = arith.cmpi ne, %1, %c0_i32_0 : i32
    scf.if %2 {
      %cst_55 = arith.constant 0.000000e+00 : f32
      %227 = vector.broadcast %cst_55 : f32 to vector<1x4xf32>
      %c0_56 = arith.constant 0 : index
      %c0_57 = arith.constant 0 : index
      %228 = vector.load %arg5[%c0_56, %c0_57] : memref<1x4xf32, #tpu.memory_space<vmem>>, vector<1x4xf32>
      tpu.vector_store %arg5[%c0_56, %c0_57], %227 {strides = array<i32>} : memref<1x4xf32, #tpu.memory_space<vmem>>, vector<1x4xf32>,
    } else {
    }
    %c0 = arith.constant 0 : index
    %c0_1 = arith.constant 0 : index
    %3 = vector.load %arg4[%c0, %c0_1] : memref<1x128xf32, #tpu.memory_space<vmem>>, vector<1x128xf32>
    %cst = arith.constant 5.000000e-01 : f32
    %4 = vector.broadcast %cst : f32 to vector<1x128xf32>
    %5 = arith.cmpf ogt, %3, %4 : vector<1x128xf32>
    %c0_2 = arith.constant 0 : index
    %c0_3 = arith.constant 0 : index
    %6 = vector.load %arg1[%c0_2, %c0_3] : memref<30x128xf32, #tpu.memory_space<vmem>>, vector<30x128xf32>
    %7 = vector.extract_strided_slice %6 {offsets = [0, 0], sizes = [5, 128], strides = [1, 1]} : vector<30x128xf32> to vector<5x128xf32>
    %8 = vector.extract_strided_slice %6 {offsets = [5, 0], sizes = [5, 128], strides = [1, 1]} : vector<30x128xf32> to vector<5x128xf32>
    %9 = vector.extract_strided_slice %6 {offsets = [10, 0], sizes = [20, 128], strides = [1, 1]} : vector<30x128xf32> to vector<20x128xf32>
    %c0_4 = arith.constant 0 : index
    %c0_5 = arith.constant 0 : index
    %10 = vector.load %arg3[%c0_4, %c0_5] : memref<20x128xf32, #tpu.memory_space<vmem>>, vector<20x128xf32>
    %11 = arith.subf %9, %10 : vector<20x128xf32>
    %12 = arith.mulf %11, %11 : vector<20x128xf32>
    %cst_6 = arith.constant 0.000000e+00 : f32
    %13 = vector.shape_cast %5 : vector<1x128xi1> to vector<1x128xi1>
    %14 = vector.broadcast %13 : vector<1x128xi1> to vector<20x128xi1>
    %15 = vector.broadcast %cst_6 : f32 to vector<20x128xf32>
    %16 = arith.select %14, %12, %15 : vector<20x128xi1>, vector<20x128xf32>
    %17 = vector.shape_cast %16 : vector<20x128xf32> to vector<1x20x128xf32>
    %cst_7 = arith.constant dense<0.000000e+00> : vector<1xf32>
    %18 = vector.multi_reduction <add>, %17, %cst_7 [1, 2] : vector<1x20x128xf32> to vector<1xf32>
    %19 = vector.shape_cast %18 : vector<1xf32> to vector<1x1x1xf32>
    %20 = vector.extract %19[0, 0, 0] : f32 from vector<1x1x1xf32>
    %21 = vector.broadcast %20 : f32 to vector<1x1xf32>
    %22 = vector.extract_strided_slice %7 {offsets = [4, 0], sizes = [1, 128], strides = [1, 1]} : vector<5x128xf32> to vector<1x128xf32>
    %23 = vector.extract_strided_slice %8 {offsets = [4, 0], sizes = [1, 128], strides = [1, 1]} : vector<5x128xf32> to vector<1x128xf32>
    %24 = arith.mulf %22, %22 : vector<1x128xf32>
    %25 = arith.mulf %23, %23 : vector<1x128xf32>
    %26 = arith.addf %24, %25 : vector<1x128xf32>
    %cst_8 = arith.constant 0.000000e+00 : f32
    %27 = vector.broadcast %cst_8 : f32 to vector<1x128xf32>
    %28 = arith.select %5, %27, %26 : vector<1x128xi1>, vector<1x128xf32>
    %29 = vector.shape_cast %28 : vector<1x128xf32> to vector<1x1x128xf32>
    %cst_9 = arith.constant dense<0.000000e+00> : vector<1xf32>
    %30 = vector.multi_reduction <add>, %29, %cst_9 [1, 2] : vector<1x1x128xf32> to vector<1xf32>
    %31 = vector.shape_cast %30 : vector<1xf32> to vector<1x1x1xf32>
    %32 = vector.extract %31[0, 0, 0] : f32 from vector<1x1x1xf32>
    %33 = vector.broadcast %32 : f32 to vector<1x1xf32>
    %cst_10 = arith.constant 5.000000e-01 : f32
    %34 = vector.broadcast %cst_10 : f32 to vector<1x1xf32>
    %35 = arith.mulf %34, %33 : vector<1x1xf32>
    %c0_11 = arith.constant 0 : index
    %c0_12 = arith.constant 0 : index
    %36 = vector.load %arg2[%c0_11, %c0_12] : memref<4x128xf32, #tpu.memory_space<vmem>>, vector<4x128xf32>
    %37 = vector.extract_strided_slice %36 {offsets = [0, 0], sizes = [1, 128], strides = [1, 1]} : vector<4x128xf32> to vector<1x128xf32>
    %38 = vector.extract_strided_slice %36 {offsets = [1, 0], sizes = [1, 128], strides = [1, 1]} : vector<4x128xf32> to vector<1x128xf32>
    %39 = vector.extract_strided_slice %36 {offsets = [2, 0], sizes = [1, 128], strides = [1, 1]} : vector<4x128xf32> to vector<1x128xf32>
    %40 = vector.extract_strided_slice %36 {offsets = [3, 0], sizes = [1, 128], strides = [1, 1]} : vector<4x128xf32> to vector<1x128xf32>
    %cst_13 = arith.constant 4.000000e+00 : f32
    %41 = vector.broadcast %cst_13 : f32 to vector<1x128xf32>
    %42 = arith.divf %37, %41 : vector<1x128xf32>
    %cst_14 = arith.constant 5.000000e-01 : f32
    %43 = vector.broadcast %cst_14 : f32 to vector<1x128xf32>
    %44 = arith.mulf %43, %39 : vector<1x128xf32>
    %45 = arith.subf %42, %44 : vector<1x128xf32>
    %cst_15 = arith.constant 4.000000e+00 : f32
    %46 = vector.broadcast %cst_15 : f32 to vector<1x128xf32>
    %47 = arith.divf %38, %46 : vector<1x128xf32>
    %cst_16 = arith.constant 5.000000e-01 : f32
    %48 = vector.broadcast %cst_16 : f32 to vector<1x128xf32>
    %49 = arith.mulf %48, %40 : vector<1x128xf32>
    %50 = arith.subf %47, %49 : vector<1x128xf32>
    %cst_17 = arith.constant 4.000000e+00 : f32
    %51 = vector.broadcast %cst_17 : f32 to vector<1x128xf32>
    %52 = arith.divf %37, %51 : vector<1x128xf32>
    %cst_18 = arith.constant 5.000000e-01 : f32
    %53 = vector.broadcast %cst_18 : f32 to vector<1x128xf32>
    %54 = arith.mulf %53, %39 : vector<1x128xf32>
    %55 = arith.addf %52, %54 : vector<1x128xf32>
    %cst_19 = arith.constant 4.000000e+00 : f32
    %56 = vector.broadcast %cst_19 : f32 to vector<1x128xf32>
    %57 = arith.divf %38, %56 : vector<1x128xf32>
    %cst_20 = arith.constant 5.000000e-01 : f32
    %58 = vector.broadcast %cst_20 : f32 to vector<1x128xf32>
    %59 = arith.mulf %58, %40 : vector<1x128xf32>
    %60 = arith.addf %57, %59 : vector<1x128xf32>
    %61 = vector.extract_strided_slice %7 {offsets = [0, 0], sizes = [1, 128], strides = [1, 1]} : vector<5x128xf32> to vector<1x128xf32>
    %62 = vector.extract_strided_slice %7 {offsets = [1, 0], sizes = [1, 128], strides = [1, 1]} : vector<5x128xf32> to vector<1x128xf32>
    %63 = vector.extract_strided_slice %7 {offsets = [2, 0], sizes = [1, 128], strides = [1, 1]} : vector<5x128xf32> to vector<1x128xf32>
    %64 = vector.extract_strided_slice %7 {offsets = [3, 0], sizes = [1, 128], strides = [1, 1]} : vector<5x128xf32> to vector<1x128xf32>
    %cst_21 = arith.constant 4.000000e+00 : f32
    %65 = vector.broadcast %cst_21 : f32 to vector<1x128xf32>
    %66 = arith.divf %61, %65 : vector<1x128xf32>
    %cst_22 = arith.constant 5.000000e-01 : f32
    %67 = vector.broadcast %cst_22 : f32 to vector<1x128xf32>
    %68 = arith.mulf %67, %63 : vector<1x128xf32>
    %69 = arith.subf %66, %68 : vector<1x128xf32>
    %cst_23 = arith.constant 4.000000e+00 : f32
    %70 = vector.broadcast %cst_23 : f32 to vector<1x128xf32>
    %71 = arith.divf %62, %70 : vector<1x128xf32>
    %cst_24 = arith.constant 5.000000e-01 : f32
    %72 = vector.broadcast %cst_24 : f32 to vector<1x128xf32>
    %73 = arith.mulf %72, %64 : vector<1x128xf32>
    %74 = arith.subf %71, %73 : vector<1x128xf32>
    %cst_25 = arith.constant 4.000000e+00 : f32
    %75 = vector.broadcast %cst_25 : f32 to vector<1x128xf32>
    %76 = arith.divf %61, %75 : vector<1x128xf32>
    %cst_26 = arith.constant 5.000000e-01 : f32
    %77 = vector.broadcast %cst_26 : f32 to vector<1x128xf32>
    %78 = arith.mulf %77, %63 : vector<1x128xf32>
    %79 = arith.addf %76, %78 : vector<1x128xf32>
    %cst_27 = arith.constant 4.000000e+00 : f32
    %80 = vector.broadcast %cst_27 : f32 to vector<1x128xf32>
    %81 = arith.divf %62, %80 : vector<1x128xf32>
    %cst_28 = arith.constant 5.000000e-01 : f32
    %82 = vector.broadcast %cst_28 : f32 to vector<1x128xf32>
    %83 = arith.mulf %82, %64 : vector<1x128xf32>
    %84 = arith.addf %81, %83 : vector<1x128xf32>
    %85 = arith.minimumf %79, %55 : vector<1x128xf32>
    %86 = arith.maximumf %69, %45 : vector<1x128xf32>
    %87 = arith.subf %85, %86 : vector<1x128xf32>
    %cst_29 = arith.constant 0.000000e+00 : f32
    %88 = vector.broadcast %cst_29 : f32 to vector<1x128xf32>
    %89 = arith.maximumf %87, %88 : vector<1x128xf32>
    %90 = arith.minimumf %84, %60 : vector<1x128xf32>
    %91 = arith.maximumf %74, %50 : vector<1x128xf32>
    %92 = arith.subf %90, %91 : vector<1x128xf32>
    %cst_30 = arith.constant 0.000000e+00 : f32
    %93 = vector.broadcast %cst_30 : f32 to vector<1x128xf32>
    %94 = arith.maximumf %92, %93 : vector<1x128xf32>
    %95 = arith.mulf %89, %94 : vector<1x128xf32>
    %96 = arith.subf %79, %69 : vector<1x128xf32>
    %97 = arith.subf %84, %74 : vector<1x128xf32>
    %98 = arith.mulf %96, %97 : vector<1x128xf32>
    %99 = arith.subf %55, %45 : vector<1x128xf32>
    %100 = arith.subf %60, %50 : vector<1x128xf32>
    %101 = arith.mulf %99, %100 : vector<1x128xf32>
    %102 = arith.addf %98, %101 : vector<1x128xf32>
    %103 = arith.subf %102, %95 : vector<1x128xf32>
    %104 = arith.divf %95, %103 : vector<1x128xf32>
    %105 = vector.extract_strided_slice %8 {offsets = [0, 0], sizes = [1, 128], strides = [1, 1]} : vector<5x128xf32> to vector<1x128xf32>
    %106 = vector.extract_strided_slice %8 {offsets = [1, 0], sizes = [1, 128], strides = [1, 1]} : vector<5x128xf32> to vector<1x128xf32>
    %107 = vector.extract_strided_slice %8 {offsets = [2, 0], sizes = [1, 128], strides = [1, 1]} : vector<5x128xf32> to vector<1x128xf32>
    %108 = vector.extract_strided_slice %8 {offsets = [3, 0], sizes = [1, 128], strides = [1, 1]} : vector<5x128xf32> to vector<1x128xf32>
    %cst_31 = arith.constant 4.000000e+00 : f32
    %109 = vector.broadcast %cst_31 : f32 to vector<1x128xf32>
    %110 = arith.divf %105, %109 : vector<1x128xf32>
    %cst_32 = arith.constant 5.000000e-01 : f32
    %111 = vector.broadcast %cst_32 : f32 to vector<1x128xf32>
    %112 = arith.mulf %111, %107 : vector<1x128xf32>
    %113 = arith.subf %110, %112 : vector<1x128xf32>
    %cst_33 = arith.constant 4.000000e+00 : f32
    %114 = vector.broadcast %cst_33 : f32 to vector<1x128xf32>
    %115 = arith.divf %106, %114 : vector<1x128xf32>
    %cst_34 = arith.constant 5.000000e-01 : f32
    %116 = vector.broadcast %cst_34 : f32 to vector<1x128xf32>
    %117 = arith.mulf %116, %108 : vector<1x128xf32>
    %118 = arith.subf %115, %117 : vector<1x128xf32>
    %cst_35 = arith.constant 4.000000e+00 : f32
    %119 = vector.broadcast %cst_35 : f32 to vector<1x128xf32>
    %120 = arith.divf %105, %119 : vector<1x128xf32>
    %cst_36 = arith.constant 5.000000e-01 : f32
    %121 = vector.broadcast %cst_36 : f32 to vector<1x128xf32>
    %122 = arith.mulf %121, %107 : vector<1x128xf32>
    %123 = arith.addf %120, %122 : vector<1x128xf32>
    %cst_37 = arith.constant 4.000000e+00 : f32
    %124 = vector.broadcast %cst_37 : f32 to vector<1x128xf32>
    %125 = arith.divf %106, %124 : vector<1x128xf32>
    %cst_38 = arith.constant 5.000000e-01 : f32
    %126 = vector.broadcast %cst_38 : f32 to vector<1x128xf32>
    %127 = arith.mulf %126, %108 : vector<1x128xf32>
    %128 = arith.addf %125, %127 : vector<1x128xf32>
    %129 = arith.minimumf %123, %55 : vector<1x128xf32>
    %130 = arith.maximumf %113, %45 : vector<1x128xf32>
    %131 = arith.subf %129, %130 : vector<1x128xf32>
    %cst_39 = arith.constant 0.000000e+00 : f32
    %132 = vector.broadcast %cst_39 : f32 to vector<1x128xf32>
    %133 = arith.maximumf %131, %132 : vector<1x128xf32>
    %134 = arith.minimumf %128, %60 : vector<1x128xf32>
    %135 = arith.maximumf %118, %50 : vector<1x128xf32>
    %136 = arith.subf %134, %135 : vector<1x128xf32>
    %cst_40 = arith.constant 0.000000e+00 : f32
    %137 = vector.broadcast %cst_40 : f32 to vector<1x128xf32>
    %138 = arith.maximumf %136, %137 : vector<1x128xf32>
    %139 = arith.mulf %133, %138 : vector<1x128xf32>
    %140 = arith.subf %123, %113 : vector<1x128xf32>
    %141 = arith.subf %128, %118 : vector<1x128xf32>
    %142 = arith.mulf %140, %141 : vector<1x128xf32>
    %143 = arith.subf %55, %45 : vector<1x128xf32>
    %144 = arith.subf %60, %50 : vector<1x128xf32>
    %145 = arith.mulf %143, %144 : vector<1x128xf32>
    %146 = arith.addf %142, %145 : vector<1x128xf32>
    %147 = arith.subf %146, %139 : vector<1x128xf32>
    %148 = arith.divf %139, %147 : vector<1x128xf32>
    %149 = arith.cmpf oge, %104, %148 : vector<1x128xf32>
    %150 = arith.select %149, %104, %148 : vector<1x128xi1>, vector<1x128xf32>
    %151 = vector.shape_cast %149 : vector<1x128xi1> to vector<1x128xi1>
    %152 = vector.broadcast %151 : vector<1x128xi1> to vector<5x128xi1>
    %153 = arith.select %152, %7, %8 : vector<5x128xi1>, vector<5x128xf32>
    %154 = vector.extract_strided_slice %153 {offsets = [4, 0], sizes = [1, 128], strides = [1, 1]} : vector<5x128xf32> to vector<1x128xf32>
    %155 = arith.subf %154, %150 : vector<1x128xf32>
    %156 = arith.mulf %155, %155 : vector<1x128xf32>
    %cst_41 = arith.constant 0.000000e+00 : f32
    %157 = vector.broadcast %cst_41 : f32 to vector<1x128xf32>
    %158 = arith.select %5, %156, %157 : vector<1x128xi1>, vector<1x128xf32>
    %159 = vector.shape_cast %158 : vector<1x128xf32> to vector<1x1x128xf32>
    %cst_42 = arith.constant dense<0.000000e+00> : vector<1xf32>
    %160 = vector.multi_reduction <add>, %159, %cst_42 [1, 2] : vector<1x1x128xf32> to vector<1xf32>
    %161 = vector.shape_cast %160 : vector<1xf32> to vector<1x1x1xf32>
    %162 = vector.extract %161[0, 0, 0] : f32 from vector<1x1x1xf32>
    %163 = vector.broadcast %162 : f32 to vector<1x1xf32>
    %164 = vector.extract_strided_slice %153 {offsets = [0, 0], sizes = [1, 128], strides = [1, 1]} : vector<5x128xf32> to vector<1x128xf32>
    %165 = vector.extract_strided_slice %36 {offsets = [0, 0], sizes = [1, 128], strides = [1, 1]} : vector<4x128xf32> to vector<1x128xf32>
    %166 = arith.subf %164, %165 : vector<1x128xf32>
    %167 = vector.extract_strided_slice %153 {offsets = [1, 0], sizes = [1, 128], strides = [1, 1]} : vector<5x128xf32> to vector<1x128xf32>
    %168 = vector.extract_strided_slice %36 {offsets = [1, 0], sizes = [1, 128], strides = [1, 1]} : vector<4x128xf32> to vector<1x128xf32>
    %169 = arith.subf %167, %168 : vector<1x128xf32>
    %170 = vector.extract_strided_slice %153 {offsets = [2, 0], sizes = [1, 128], strides = [1, 1]} : vector<5x128xf32> to vector<1x128xf32>
    %171 = math.sqrt %170 : vector<1x128xf32>
    %172 = vector.extract_strided_slice %36 {offsets = [2, 0], sizes = [1, 128], strides = [1, 1]} : vector<4x128xf32> to vector<1x128xf32>
    %173 = math.sqrt %172 : vector<1x128xf32>
    %174 = arith.subf %171, %173 : vector<1x128xf32>
    %175 = vector.extract_strided_slice %153 {offsets = [3, 0], sizes = [1, 128], strides = [1, 1]} : vector<5x128xf32> to vector<1x128xf32>
    %176 = math.sqrt %175 : vector<1x128xf32>
    %177 = vector.extract_strided_slice %36 {offsets = [3, 0], sizes = [1, 128], strides = [1, 1]} : vector<4x128xf32> to vector<1x128xf32>
    %178 = math.sqrt %177 : vector<1x128xf32>
    %179 = arith.subf %176, %178 : vector<1x128xf32>
    %180 = arith.mulf %166, %166 : vector<1x128xf32>
    %181 = arith.mulf %169, %169 : vector<1x128xf32>
    %182 = arith.addf %180, %181 : vector<1x128xf32>
    %183 = arith.mulf %174, %174 : vector<1x128xf32>
    %184 = arith.addf %182, %183 : vector<1x128xf32>
    %185 = arith.mulf %179, %179 : vector<1x128xf32>
    %186 = arith.addf %184, %185 : vector<1x128xf32>
    %cst_43 = arith.constant 0.000000e+00 : f32
    %187 = vector.broadcast %cst_43 : f32 to vector<1x128xf32>
    %188 = arith.select %5, %186, %187 : vector<1x128xi1>, vector<1x128xf32>
    %189 = vector.shape_cast %188 : vector<1x128xf32> to vector<1x1x128xf32>
    %cst_44 = arith.constant dense<0.000000e+00> : vector<1xf32>
    %190 = vector.multi_reduction <add>, %189, %cst_44 [1, 2] : vector<1x1x128xf32> to vector<1xf32>
    %191 = vector.shape_cast %190 : vector<1xf32> to vector<1x1x1xf32>
    %192 = vector.extract %191[0, 0, 0] : f32 from vector<1x1x1xf32>
    %193 = vector.broadcast %192 : f32 to vector<1x1xf32>
    %cst_45 = arith.constant 5.000000e+00 : f32
    %194 = vector.broadcast %cst_45 : f32 to vector<1x1xf32>
    %195 = arith.mulf %194, %193 : vector<1x1xf32>
    %196 = tpu.iota {dimensions = array<i32: 1>} : vector<1x4xi32>
    %c0_i32_46 = arith.constant 0 : i32
    %197 = vector.broadcast %c0_i32_46 : i32 to vector<1x4xi32>
    %198 = arith.cmpi eq, %196, %197 : vector<1x4xi32>
    %cst_47 = arith.constant 0.000000e+00 : f32
    %199 = vector.shape_cast %21 : vector<1x1xf32> to vector<1x1xf32>
    %200 = vector.broadcast %199 : vector<1x1xf32> to vector<1x4xf32>
    %201 = vector.broadcast %cst_47 : f32 to vector<1x4xf32>
    %202 = arith.select %198, %200, %201 : vector<1x4xi1>, vector<1x4xf32>
    %c1_i32 = arith.constant 1 : i32
    %203 = vector.broadcast %c1_i32 : i32 to vector<1x4xi32>
    %204 = arith.cmpi eq, %196, %203 : vector<1x4xi32>
    %cst_48 = arith.constant 0.000000e+00 : f32
    %205 = vector.shape_cast %35 : vector<1x1xf32> to vector<1x1xf32>
    %206 = vector.broadcast %205 : vector<1x1xf32> to vector<1x4xf32>
    %207 = vector.broadcast %cst_48 : f32 to vector<1x4xf32>
    %208 = arith.select %204, %206, %207 : vector<1x4xi1>, vector<1x4xf32>
    %209 = arith.addf %202, %208 : vector<1x4xf32>
    %c2_i32 = arith.constant 2 : i32
    %210 = vector.broadcast %c2_i32 : i32 to vector<1x4xi32>
    %211 = arith.cmpi eq, %196, %210 : vector<1x4xi32>
    %cst_49 = arith.constant 0.000000e+00 : f32
    %212 = vector.shape_cast %195 : vector<1x1xf32> to vector<1x1xf32>
    %213 = vector.broadcast %212 : vector<1x1xf32> to vector<1x4xf32>
    %214 = vector.broadcast %cst_49 : f32 to vector<1x4xf32>
    %215 = arith.select %211, %213, %214 : vector<1x4xi1>, vector<1x4xf32>
    %216 = arith.addf %209, %215 : vector<1x4xf32>
    %c3_i32 = arith.constant 3 : i32
    %217 = vector.broadcast %c3_i32 : i32 to vector<1x4xi32>
    %218 = arith.cmpi eq, %196, %217 : vector<1x4xi32>
    %cst_50 = arith.constant 0.000000e+00 : f32
    %219 = vector.shape_cast %163 : vector<1x1xf32> to vector<1x1xf32>
    %220 = vector.broadcast %219 : vector<1x1xf32> to vector<1x4xf32>
    %221 = vector.broadcast %cst_50 : f32 to vector<1x4xf32>
    %222 = arith.select %218, %220, %221 : vector<1x4xi1>, vector<1x4xf32>
    %223 = arith.addf %216, %222 : vector<1x4xf32>
    %c0_51 = arith.constant 0 : index
    %c0_52 = arith.constant 0 : index
    %224 = vector.load %arg5[%c0_51, %c0_52] : memref<1x4xf32, #tpu.memory_space<vmem>>, vector<1x4xf32>
    %225 = arith.addf %224, %223 : vector<1x4xf32>
    %c0_53 = arith.constant 0 : index
    %c0_54 = arith.constant 0 : index
    %226 = vector.load %arg5[%c0_53, %c0_54] : memref<1x4xf32, #tpu.memory_space<vmem>>, vector<1x4xf32>
    tpu.vector_store %arg5[%c0_53, %c0_54], %225 {strides = array<i32>} : memref<1x4xf32, #tpu.memory_space<vmem>>, vector<1x4xf32>,
    return
  }
  func.func @transform_0(%arg0: i32) -> (i32, i32) {
    %c0_i32 = arith.constant 0 : i32
    %c0_i32_0 = arith.constant 0 : i32
    return %c0_i32, %arg0 : i32, i32
  }
  func.func @transform_1(%arg0: i32) -> (i32, i32) {
    %c0_i32 = arith.constant 0 : i32
    %c0_i32_0 = arith.constant 0 : i32
    return %c0_i32, %arg0 : i32, i32
  }
  func.func @transform_2(%arg0: i32) -> (i32, i32) {
    %c0_i32 = arith.constant 0 : i32
    %c0_i32_0 = arith.constant 0 : i32
    return %c0_i32, %arg0 : i32, i32
  }
  func.func @transform_3(%arg0: i32) -> (i32, i32) {
    %c0_i32 = arith.constant 0 : i32
    %c0_i32_0 = arith.constant 0 : i32
    return %c0_i32, %arg0 : i32, i32
  }
  func.func @transform_4(%arg0: i32) -> (i32, i32) {
    %c0_i32 = arith.constant 0 : i32
    %c0_i32_0 = arith.constant 0 : i32
    %c0_i32_1 = arith.constant 0 : i32
    return %c0_i32, %c0_i32_0 : i32, i32
  }
}

</mosaic_0001>

<bundles_post_ra>
// kernel: tpu_custom_call.1
= control target key start
LH: loop header
LB: loop body
LE: loop exit
PB: predicated region body
PF: predicated region fallthrough
CT: control target
= control target key end

     0   :  { %9 = vsyncpa [#allocation3], 0  ;;  %s627_s0 = inlined_call_operand.hbm [shape: f32[30,128], index: 0, kind: input, shape index: {}]   ;;  %s628_s1 = inlined_call_operand.hbm [shape: f32[4,128], index: 1, kind: input, shape index: {}]   ;;  %s629_s2 = inlined_call_operand.hbm [shape: f32[20,128], index: 2, kind: input, shape index: {}]   ;;  %s630_s3 = inlined_call_operand.vmem [shape: f32[1,128], index: 3, kind: input, shape index: {}]   ;;  %s631_s4 = inlined_call_operand.hbm [shape: f32[1,4], index: 4, kind: output, shape index: {}]  }
   0x1   :  { %10 = vsyncpa [#allocation6], 0  ;;  %s30_s17 = sshll.u32 %s628_s1, 4  ;;  %s31_s17 = int_to_ptr.hbm [resolvable:$true] %s30_s17 }
   0x2   :  { %11 = vsyncpa [#allocation4], 0  ;;  %s513_s18 = smov [#allocation5]   ;;  %s16_s22 = sshll.u32 %s627_s0, 4  ;;  %s17_s22 = int_to_ptr.hbm [resolvable:$true] %s16_s22 }
   0x3   :  { %s32_s19 = sshll.u32 %s513_s18, 4  ;;  %s514_s23 = smov [#allocation2]   ;;  %s33_s19 = int_to_ptr.vmem [resolvable:$true] %s32_s19 }
   0x4   :  { %35 = dma.hbm_to_vmem [thread:$0]  %s31_s17, 64, %s33_s19, [#allocation6]  }
   0x5   :  { %s18_s24 = sshll.u32 %s514_s23, 4  ;;  %s515_s25 = smov 128   ;;  %s19_s24 = int_to_ptr.vmem [resolvable:$true] %s18_s24 }
   0x6   :  { %s516_s26 = smov 8   ;;  %s40_s1 = sshll.u32 %s629_s2, 4  ;;  %s41_s1 = int_to_ptr.hbm [resolvable:$true] %s40_s1 }
   0x7   :  { %24 = dma.hbm_to_vmem [thread:$0]  %s17_s22, 512, %s19_s24, [#allocation3], %s515_s25, %s515_s25, %s516_s26  }
   0x8   :  { %s517_s29 = smov [#allocation7]  }
   0x9   :  { %s42_s30 = sshll.u32 %s517_s29, 4  ;;  %s43_s30 = int_to_ptr.vmem [resolvable:$true] %s42_s30 }
   0xa   :  { %48 = dma.hbm_to_vmem [thread:$0]  %s41_s1, 384, %s43_s30, [#allocation6], %s515_s25, %s515_s25, %s516_s26  }
   0xb   :  { %507 = dma.done.wait [#allocation3], 512  }
   0xc   :  { %508 = vsyncadd [#allocation3], 4294966784 }
   0xd   :  { %509 = dma.done.wait [#allocation6], 448  }
   0xe   :  { %510 = vsyncadd [#allocation6], 4294966848  ;;  %v518_v0 = vmov 4.0   ;;  %v559_v1 = vld [vmem:[%s630_s3] sm:$0x1]  ;;  %v561_v2 = vld [vmem:[#allocation2] sm:$0xff] }
   0xf   :  { %401 = vrcp.f32 %v518_v0  ;;  %vm70_vm0 = vcmp.gt.f32.partialorder %v559_v1, 0.5  ;;  %v564_v4 = vld [vmem:[#allocation2 + $0x8] sm:$0xff]  ;;  %v74_v5 = vld [vmem:[#allocation2 + $0x18] sm:$0x3f]  ;;  %vm81_vm1 = vcmask 1041408   ;;  %v519_v10 = vmov 0  }
  0x10   :  { %v75_v6 = vld [vmem:[#allocation7] sm:$0xff]  ;;  %v76_v7 = vld [vmem:[#allocation7 + $0x8] sm:$0xff]  ;;  %v77_v8 = vld [vmem:[#allocation7 + $0x10] sm:$0xf]  ;;  %v96_v11 = vsel %vm70_vm0, 1, %v519_v10  ;;  %v168_v21 = vmul.f32 0.5, %v561_v2 }
  0x11   :  { %v82_v9 = vrot.slane %v75_v6, 6  ;;  %v73_v13 = vld [vmem:[#allocation2 + $0x10] sm:$0xff]  ;;  %v83_v14 = vrot.slane %v76_v7, 6  ;;  %v85_v15 = vrot.slane %v77_v8, 6  ;;  %v97_v16 = vperm.slane %v96_v11, 0  ;;  %s521_s8 = smov [#allocation8]  }
  0x12   :  { %v569_v17 = vld [vmem:[#allocation5] sm:$0xf]  ;;  %v209_v25 = vmul.f32 0.5, %v564_v4  ;;  %vm105_vm3 = vcmask 1045504   ;;  %vm115_vm5 = vcmask 1043456   ;;  %v170_v36 = vrot.slane %v168_v21, 2 }
  0x13   :  { %v90_v18 = vsub.f32 %v564_v4, %v82_v9  ;;  %v161_v20 = vmul.f32 0.5, %v569_v17  ;;  %v84_v22 = vsel %vm81_vm1, %v82_v9, %v83_v14  ;;  %v86_v23 = vsel %vm81_vm1, %v83_v14, %v85_v15  ;;  %s371_s9 = sshll.u32 %s521_s8, 4  ;;  %s373_s12 = sshll.u32 %s631_s4, 4  ;;  %s372_s9 = int_to_ptr.vmem [resolvable:$true] %s371_s9  ;;  %s374_s12 = int_to_ptr.hbm [resolvable:$true] %s373_s12 }
  0x14   :  { %vm576_vm2 = vcmp.eq.s32.totalorder %v97_v16, 1  ;;  %v91_v26 = vsub.f32 %v73_v13, %v84_v22  ;;  %v92_v27 = vsub.f32 %v74_v5, %v86_v23  ;;  %v211_v40 = vrot.slane %v209_v25, 2 }
  0x15   :  { %v402_v3 = vpop.eup %401  ;;  %v93_v28 = vmul.f32 %v90_v18, %v90_v18  ;;  %v163_v35 = vrot.slane %v161_v20, 2  ;;  %v128_v16 = vmul.f32 %v564_v4, %v564_v4  ;;  %v127_v25 = vmul.f32 %v561_v2, %v561_v2 }
  0x16   :  { %v154_v12 = vmul.f32 4.0, %v402_v3  ;;  %vm158_vm4 = vweird.f32 %v402_v3  ;;  %v94_v30 = vmul.f32 %v91_v26, %v91_v26  ;;  %v95_v31 = vmul.f32 %v92_v27, %v92_v27 }
  0x17   :  { %v99_v32 = vsel %vm576_vm2, %v93_v28, 0.0  ;;  %v130_v26 = vrot.slane %v128_v16, 5  ;;  %vm139_vm6 = vcmask 1040384   ;;  %vm268_vm15 = vcmask 1042432  }
  0x18   :  { %v155_v19 = vsub.f32 1.0, %v154_v12  ;;  %v106_v34 = vrot.slane %v99_v32, 2  ;;  %v100_v37 = vsel %vm576_vm2, %v94_v30, 0.0  ;;  %v101_v38 = vsel %vm576_vm2, %v95_v31, 0.0 }
  0x19   :  { %v107_v41 = vrot.slane %v100_v37, 2  ;;  %v109_v42 = vrot.slane %v101_v38, 2  ;;  %v132_v30 = vadd.f32 %v130_v26, %v127_v25 }
  0x1a   :  { %v156_v29 = vmul.f32 %v402_v3, %v155_v19 }
  0x1b   :  { %v108_v45 = vsel %vm105_vm3, %v106_v34, %v107_v41  ;;  %v110_v46 = vsel %vm105_vm3, %v107_v41, %v109_v42  ;;  %v116_v47 = vsel %vm115_vm5, %v109_v42, 0.0  ;;  %134 = vst [vmem:[#allocation1] sm:$0xff] %v132_v30  ;;  %vm315_vm3 = vcmp.eq.f32.partialorder %v569_v17, inf }
  0x1c   :  { %v157_v33 = vadd.f32 %v402_v3, %v156_v29  ;;  %v114_v49 = vadd.f32 %v110_v46, %v108_v45 }
  0x1e   :  { %v159_v39 = vsel %vm158_vm4, %v402_v3, %v157_v33  ;;  %v117_v56 = vadd.f32 %v116_v47, %v114_v49  ;;  %vm317_vm4 = vcmp.eq.f32.partialorder %v569_v17, 0.0 }
  0x1f   :  { %v160_v43 = vmul.f32 %v159_v39, %v569_v17  ;;  %v167_v44 = vmul.f32 %v159_v39, %v561_v2 }
  0x20   :  { %118 = vadd.xlane.f32.xlu0 %v117_v56 }
  0x21   :  { %v165_v48 = vsub.f32 %v160_v43, %v163_v35  ;;  %v166_v50 = vadd.f32 %v163_v35, %v160_v43  ;;  %v172_v51 = vsub.f32 %v167_v44, %v170_v36  ;;  %v173_v52 = vadd.f32 %v170_v36, %v167_v44 }
  0x22   :  { %v213_v53 = vsub.f32 %v167_v44, %v211_v40  ;;  %v214_v54 = vadd.f32 %v211_v40, %v167_v44  ;;  %v136_v35 = vld [vmem:[#allocation1 + $0x4] ss:$9 sm:$0xff] }
  0x23   :  { %v220_v55 = vrot.slane %v165_v48, 3  ;;  %v174_v57 = vmin.f32 %v173_v52, %v166_v50  ;;  %v175_v58 = vmax.f32 %v172_v51, %v165_v48  ;;  %v182_v59 = vsub.f32 %v173_v52, %v172_v51 }
  0x24   :  { %v187_v60 = vsub.f32 %v166_v50, %v165_v48  ;;  %v216_v61 = vrot.slane %v166_v50, 3  ;;  %v233_v5 = vsub.f32 %v214_v54, %v213_v53  ;;  %v138_v36 = vsel %vm70_vm0, 0.0, %v136_v35 }
  0x25   :  { %v222_v62 = vmax.f32 %v172_v51, %v220_v55  ;;  %v226_v63 = vmax.f32 %v213_v53, %v220_v55  ;;  %v176_v0 = vsub.f32 %v174_v57, %v175_v58  ;;  %v184_v3 = vrot.slane %v182_v59, 1 }
  0x26   :  { %v189_v6 = vrot.slane %v187_v60, 1  ;;  %v218_v7 = vmin.f32 %v173_v52, %v216_v61  ;;  %v225_v8 = vmin.f32 %v214_v54, %v216_v61  ;;  %v235_v12 = vrot.slane %v233_v5, 1 }
  0x27   :  { %v177_v9 = vmax.f32 %v176_v0, 0.0  ;;  %v186_v11 = vmul.f32 %v184_v3, %v182_v59  ;;  %v140_v40 = vsel %vm139_vm6, %v138_v36, 0.0 }
  0x28   :  { %v191_v13 = vmul.f32 %v189_v6, %v187_v60  ;;  %v223_v14 = vsub.f32 %v218_v7, %v222_v62  ;;  %v227_v15 = vsub.f32 %v225_v8, %v226_v63  ;;  %v237_v19 = vmul.f32 %v235_v12, %v182_v59  ;;  %141 = vadd.xlane.f32.xlu0 %v140_v40 }
  0x29   :  { %v179_v18 = vrot.slane %v177_v9, 1  ;;  %v269_v62 = vrot.slane %v561_v2, 5  ;;  %v270_v63 = vrot.slane %v564_v4, 5 }
  0x2a   :  { %v192_v20 = vadd.f32 %v191_v13, %v186_v11  ;;  %v224_v21 = vmax.f32 %v223_v14, 0.0  ;;  %v228_v22 = vmax.f32 %v227_v15, 0.0  ;;  %v239_v23 = vrot.slane %v191_v13, 3 }
  0x2b   :  { %v181_v24 = vmul.f32 %v179_v18, %v177_v9  ;;  %v271_v7 = vsel %vm268_vm15, %v269_v62, %v270_v63 }
  0x2c   :  { %v230_v27 = vrot.slane %v228_v22, 1  ;;  %v241_v28 = vadd.f32 %v239_v23, %v237_v19 }
  0x2d   :  { %v193_v29 = vsub.f32 %v192_v20, %v181_v24 }
  0x2e   :  { %v232_v31 = vmul.f32 %v230_v27, %v224_v21 }
  0x2f   :  { %403 = vrcp.f32 %v193_v29  ;;  %vm199_vm7 = vweird.f32 %v193_v29  ;;  %v205_v39 = vand.u32 2147483648, %v193_v29  ;;  %v203_v41 = vand.u32 2147483647, %v193_v29 }
  0x30   :  { %v242_v32 = vsub.f32 %v241_v28, %v232_v31 }
  0x31   :  { %v206_v49 = vor.u32 1.1754944e-38, %v205_v39  ;;  %vm204_vm12 = vcmp.eq.f32.partialorder %v203_v41, 8.507059e+37 }
  0x32   :  { %405 = vrcp.f32 %v242_v32  ;;  %v254_v44 = vand.u32 2147483648, %v242_v32  ;;  %vm248_vm10 = vweird.f32 %v242_v32  ;;  %v252_v47 = vand.u32 2147483647, %v242_v32 }
  0x33   :  { %407 = vrsqrt.f32 %v569_v17 }
  0x34   :  { %v255_v52 = vor.u32 1.1754944e-38, %v254_v44  ;;  %vm253_vm14 = vcmp.eq.f32.partialorder %v252_v47, 8.507059e+37 }
  0x35   :  { %v404_v33 = vpop.eup %403 }
  0x36   :  { %v195_v34 = vmul.f32 %v404_v33, %v193_v29  ;;  %vm200_vm8 = vweird.f32 %v404_v33 }
  0x37   :  { %vm599_vm9 = vmor %vm199_vm7, %vm200_vm8 }
  0x38   :  { %v406_v37 = vpop.eup %405  ;;  %v196_v38 = vsub.f32 1.0, %v195_v34 }
  0x39   :  { %v244_v42 = vmul.f32 %v406_v37, %v242_v32  ;;  %vm249_vm11 = vweird.f32 %v406_v37  ;;  %v408_v54 = vpop.eup %407 }
  0x3a   :  { %v197_v43 = vmul.f32 %v404_v33, %v196_v38  ;;  %vm250_vm13 = vmor %vm248_vm10, %vm249_vm11  ;;  %v309_v60 = vmul.f32 %v408_v54, %v569_v17 }
  0x3b   :  { %v245_v46 = vsub.f32 1.0, %v244_v42 }
  0x3c   :  { %v198_v48 = vadd.f32 %v404_v33, %v197_v43  ;;  %v310_v5 = vmul.f32 %v408_v54, %v309_v60 }
  0x3d   :  { %v246_v50 = vmul.f32 %v406_v37, %v245_v46 }
  0x3e   :  { %v202_v51 = vsel %vm599_vm9, %v404_v33, %v198_v48  ;;  %v311_v11 = vmul.f32 0.5, %v310_v5 }
  0x3f   :  { %v247_v53 = vadd.f32 %v406_v37, %v246_v50  ;;  %v207_v55 = vsel %vm204_vm12, %v206_v49, %v202_v51 }
  0x40   :  { %v208_v58 = vmul.f32 %v207_v55, %v181_v24  ;;  %v312_v14 = vsub.f32 1.5, %v311_v11  ;;  %v318_v24 = vand.u32 2147483648, %v569_v17 }
  0x41   :  { %v251_v56 = vsel %vm250_vm13, %v406_v37, %v247_v53 }
  0x42   :  { %v256_v57 = vsel %vm253_vm14, %v255_v52, %v251_v56  ;;  %v313_v16 = vmul.f32 %v408_v54, %v312_v14 }
  0x43   :  { %v257_v59 = vmul.f32 %v256_v57, %v232_v31 }
  0x44   :  { %v314_v21 = vmul.f32 %v313_v16, %v569_v17 }
  0x45   :  { %v259_v61 = vrot.slane %v257_v59, 5 }
  0x46   :  { %v316_v26 = vsel %vm315_vm3, %v569_v17, %v314_v21 }
  0x47   :  { %vm261_vm1 = vcmp.ge.f32.partialorder %v208_v58, %v259_v61  ;;  %v319_v30 = vsel %vm317_vm4, %v318_v24, %v316_v26 }
  0x48   :  { %v262_v0 = vsel %vm261_vm1, %v208_v58, %v259_v61  ;;  %v263_v3 = vsel %vm261_vm1, 1, %v519_v10 }
  0x49   :  { %v264_v6 = vperm.slane %v263_v3, 0  ;;  %v275_v8 = vrot.slane %v262_v0, 4 }
  0x4b   :  { %vm265_vm2 = vcmp.eq.s32.totalorder %v264_v6, 1 }
  0x4c   :  { %v273_v9 = vsel %vm265_vm2, %v561_v2, %v271_v7 }
  0x4d   :  { %v277_v12 = vsub.f32 %v273_v9, %v275_v8  ;;  %409 = vrsqrt.f32 %v273_v9  ;;  %v295_v10 = vsub.f32 %v273_v9, %v569_v17  ;;  %vm303_vm5 = vcmp.eq.f32.partialorder %v273_v9, inf }
  0x4e   :  { %v306_v28 = vand.u32 2147483648, %v273_v9  ;;  %vm305_vm7 = vcmp.eq.f32.partialorder %v273_v9, 0.0  ;;  %v520_v8 = vmov 0.0  }
  0x4f   :  { %v278_v13 = vmul.f32 %v277_v12, %v277_v12  ;;  %v321_v27 = vmul.f32 %v295_v10, %v295_v10 }
  0x51   :  { %280 = vst [vmem:[#allocation1] sm:$0xff] %v278_v13  ;;  %v323_v32 = vrot.slane %v321_v27, 1 }
  0x53   :  { %v410_v15 = vpop.eup %409  ;;  %v325_v35 = vadd.f32 %v323_v32, %v321_v27 }
  0x54   :  { %v297_v4 = vmul.f32 %v410_v15, %v273_v9 }
  0x56   :  { %v298_v18 = vmul.f32 %v410_v15, %v297_v4 }
  0x58   :  { %v282_v19 = vld [vmem:[#allocation1 + $0x4] ss:$9 sm:$0xff]  ;;  %v299_v20 = vmul.f32 0.5, %v298_v18 }
  0x59   :  { %v284_v22 = vsel %vm70_vm0, %v282_v19, 0.0 }
  0x5a   :  { %v285_v2 = vsel %vm139_vm6, %v284_v22, 0.0  ;;  %v300_v23 = vsub.f32 1.5, %v299_v20 }
  0x5b   :  { %286 = vadd.xlane.f32.xlu1 %v285_v2 }
  0x5c   :  { %v301_v25 = vmul.f32 %v410_v15, %v300_v23 }
  0x5e   :  { %v302_v29 = vmul.f32 %v301_v25, %v273_v9 }
  0x60   :  { %v304_v31 = vsel %vm303_vm5, %v273_v9, %v302_v29  ;;  %v347_v9 = vlaneseq }
  0x61   :  { %v307_v33 = vsel %vm305_vm7, %v306_v28, %v304_v31 }
  0x62   :  { %v320_v34 = vsub.f32 %v307_v33, %v319_v30  ;;  %v348_v11 = vand.u32 127, %v347_v9 }
  0x64   :  { %v326_v36 = vmul.f32 %v320_v34, %v320_v34  ;;  %vm352_vm8 = vcmp.eq.s32.totalorder %v348_v11, 1  ;;  %vm355_vm9 = vcmp.eq.s32.totalorder %v348_v11, 2  ;;  %vm358_vm10 = vcmp.eq.s32.totalorder %v348_v11, 3 }
  0x66   :  { %v328_v37 = vrot.slane %v326_v36, 2  ;;  %v331_v38 = vrot.slane %v326_v36, 3 }
  0x68   :  { %v330_v39 = vadd.f32 %v328_v37, %v325_v35 }
  0x6a   :  { %v333_v40 = vadd.f32 %v331_v38, %v330_v39 }
  0x6c   :  { %v334_v41 = vsel %vm70_vm0, %v333_v40, 0.0  ;;  %vm67_vm0 = vcmask 24576  }
  0x6d   :  { %v335_v17 = vsel %vm139_vm6, %v334_v41, 0.0  ;;  %68 = vst.msk [vmem:[#allocation8] sm:$0x1] %vm67_vm0, %v520_v8  ;;  %vm349_vm6 = vcmp.eq.s32.totalorder %v348_v11, 0 }
  0x6e   :  { %336 = vadd.xlane.f32.xlu1 %v335_v17 }
  0x74   :  { %v362_v2 = vld [vmem:[#allocation8] sm:$0x1] }
  0x93   :  { %v119_v42 = vpop.xlane.xlu0 %118 }
  0x94   :  { %v120_v43 = vrot.slane %v119_v42, 4 }
  0x96   :  { %v121_v44 = vadd.f32 %v120_v43, %v119_v42 }
  0x98   :  { %v122_v47 = vrot.slane %v121_v44, 2 }
  0x9a   :  { %v123_v51 = vadd.f32 %v122_v47, %v121_v44 }
  0x9b   :  { %v142_v45 = vpop.xlane.xlu0 %141 }
  0x9c   :  { %v143_v46 = vrot.slane %v142_v45, 4  ;;  %v124_v52 = vrot.slane %v123_v51, 1 }
  0x9e   :  { %v144_v48 = vadd.f32 %v143_v46, %v142_v45  ;;  %v125_v54 = vadd.f32 %v124_v52, %v123_v51 }
  0xa0   :  { %v145_v49 = vrot.slane %v144_v48, 2  ;;  %384 = vpush %v125_v54 }
  0xa2   :  { %v146_v50 = vadd.f32 %v145_v49, %v144_v48 }
  0xa4   :  { %v147_v53 = vrot.slane %v146_v50, 1 }
  0xa6   :  { %v148_v55 = vadd.f32 %v147_v53, %v146_v50 }
  0xa8   :  { %386 = vpush %v148_v55 }
  0xce   :  { %v287_v1 = vpop.xlane.xlu1 %286 }
  0xcf   :  { %v288_v56 = vrot.slane %v287_v1, 4 }
  0xd1   :  { %v289_v57 = vadd.f32 %v288_v56, %v287_v1  ;;  %s385_s2 = spop %384 }
  0xd2   :  { %v350_v14 = vstv %s385_s2 }
  0xd3   :  { %v290_v58 = vrot.slane %v289_v57, 2  ;;  %v351_v15 = vsel %vm349_vm6, %v350_v14, 0.0 }
  0xd5   :  { %v291_v59 = vadd.f32 %v290_v58, %v289_v57 }
  0xd7   :  { %v292_v60 = vrot.slane %v291_v59, 1 }
  0xd9   :  { %v293_v61 = vadd.f32 %v292_v60, %v291_v59  ;;  %s387_s3 = spop %386 }
  0xda   :  { %v150_v12 = vstv %s387_s3 }
  0xdb   :  { %388 = vpush %v293_v61  ;;  %v151_v13 = vmul.f32 0.5, %v150_v12 }
  0xdd   :  { %v353_v4 = vsel %vm352_vm8, %v151_v13, 0.0 }
  0xde   :  { %v354_v19 = vadd.f32 %v353_v4, %v351_v15 }
  0xe1   :  { %v337_v62 = vpop.xlane.xlu1 %336 }
  0xe2   :  { %v338_v63 = vrot.slane %v337_v62, 4 }
  0xe4   :  { %v339_v0 = vadd.f32 %v338_v63, %v337_v62 }
  0xe6   :  { %v340_v3 = vrot.slane %v339_v0, 2 }
  0xe8   :  { %v341_v5 = vadd.f32 %v340_v3, %v339_v0 }
  0xea   :  { %v342_v6 = vrot.slane %v341_v5, 1 }
  0xec   :  { %v343_v7 = vadd.f32 %v342_v6, %v341_v5 }
  0xee   :  { %390 = vpush %v343_v7 }
 0x10c   :  { %s389_s6 = spop %388 }
 0x10d   :  { %v359_v10 = vstv %s389_s6 }
 0x10e   :  { %v360_v22 = vsel %vm358_vm10, %v359_v10, 0.0 }
 0x11f   :  { %s391_s7 = spop %390 }
 0x120   :  { %v345_v16 = vstv %s391_s7 }
 0x121   :  { %v346_v18 = vmul.f32 5.0, %v345_v16 }
 0x123   :  { %v356_v20 = vsel %vm355_vm9, %v346_v18, 0.0 }
 0x124   :  { %v357_v21 = vadd.f32 %v356_v20, %v354_v19 }
 0x126   :  { %v361_v23 = vadd.f32 %v360_v22, %v357_v21 }
 0x128   :  { %v363_v24 = vadd.f32 %v362_v2, %v361_v23 }
 0x12a   :  { %365 = vst.msk [vmem:[#allocation8] sm:$0x1] %vm67_vm0, %v363_v24 }
 0x12b   :  { %376 = dma.vmem_to_hbm [thread:$0]  %s372_s9, 16, %s374_s12, [#allocation4]  }
 0x12c   :  { %511 = dma.done.wait [#allocation4], 16  }
 0x12d   :  { %512 = vsyncadd [#allocation4], 4294967280 }
 0x12e   :  { %381 = vsyncpa [#allocation3], 1 }
 0x12f   :  { %382 = vsyncpa [#allocation6], 1 }
 0x130   :  { %383 = vsyncpa [#allocation4], 1 }

</bundles_post_ra>
